<compile_context>
chip_gen: v6e
topology: v6e:2x2x1
jax: 0.10.0
libtpu: 0.0.40
codegen_flags: <defaults>
</compile_context>

<pallas_src>
import functools

import jax
import jax.numpy as jnp
from jax import lax
from jax.experimental import pallas as pl
from jax.experimental.pallas import tpu as pltpu

_LANES = 128                          # batch elements per row (lane axis)
_ROW_ALIGN = 8                        # f32 sublane granularity
_BATCH_ALIGN = _ROW_ALIGN * _LANES    # pad batch to a multiple of 1024


# ---------------------------------------------------------------------------
# Kernel
#   params_ref: flat (21,) f32 in SMEM:
#       [ w1[0,0], w1[0,1], ..., w1[4,0], w1[4,1],   (10)  fc1 weight
#         b1[0..4],                                  (5)   fc1 bias
#         w2[0,0..4],                                (5)   fc2 weight
#         b2[0] ]                                    (1)   fc2 bias
#   x_ref: (2, TBS, 128) f32 VMEM tile  (feature, batch-row, batch-lane)
#   o_ref: (TBS, 128)    f32 VMEM tile  (sublane+lane dense over batch)
#   sub:   static rows per inner compute chunk; divides TBS.
# ---------------------------------------------------------------------------
def mlp_kernel(params_ref, x_ref, o_ref, *, sub):
    tbs = o_ref.shape[0]

    # Read the 21 parameter scalars once per tile (SMEM scalar path).
    wb = [(params_ref[2 * j], params_ref[2 * j + 1],     # w1[j,0], w1[j,1]
           params_ref[10 + j], params_ref[15 + j])       # b1[j],   w2[0,j]
          for j in range(5)]
    b2 = params_ref[20]
    # fc2-bias-initialized accumulator, hoisted out of the loop: no per-iter
    # re-broadcast and no final "+ b2" pass over the accumulator.
    acc_init = jnp.full((sub, _LANES), b2, dtype=jnp.float32)

    def body(c, carry):
        r = pl.multiple_of(c * sub, sub)
        x0 = x_ref[0, pl.ds(r, sub), :]          # (sub, 128) feature 0
        x1 = x_ref[1, pl.ds(r, sub), :]          # (sub, 128) feature 1
        acc = acc_init
        for w10, w11, b1j, w2j in wb:            # static unroll: 5 hidden units
            h = jnp.maximum(x0 * w10 + x1 * w11 + b1j, 0.0)   # ReLU(fc1)_j
            acc = acc + h * w2j
        o_ref[pl.ds(r, sub), :] = acc            # dense, unmasked (sub,128) store
        return carry

    lax.fori_loop(0, tbs // sub, body, 0)


# ---------------------------------------------------------------------------
# Wrappers
# ---------------------------------------------------------------------------
def pack_params(w1, b1, w2, b2):
    """Pack torch-layout params into one flat (21,) f32 vector. Done ONCE at
    init so no transpose/reshape glue runs in the forward hot path."""
    return jnp.concatenate(
        [w1.reshape(-1), b1.reshape(-1), w2.reshape(-1), b2.reshape(-1)]
    ).astype(jnp.float32)


def _pick_sub(tbs):
    for s in (64, 32, 16, 8):
        if tbs % s == 0:
            return s
    return tbs  # unreachable: tbs is always a multiple of 8 here


@functools.partial(jax.jit, static_argnames=("tbs",))
def net_forward_feature_major(x_fm, params, *, tbs=2048):
    """Fast path. x_fm: (2, B) f32 feature-major. Returns (B, 1) f32
    (== Net.forward(x_fm.T))."""
    assert x_fm.shape[0] == 2
    assert tbs % _ROW_ALIGN == 0
    B = x_fm.shape[1]

    # Pad the batch only up to a multiple of 8*128 so it reshapes into whole
    # (8,128) sublane x lane tiles (<=1023 pad elems; zero-copy when aligned).
    Bp = pl.cdiv(B, _BATCH_ALIGN) * _BATCH_ALIGN
    x_fm = x_fm.astype(jnp.float32)
    if Bp != B:
        x_fm = jnp.pad(x_fm, ((0, 0), (0, Bp - B)))
    R = Bp // _LANES                      # 128-lane batch rows (multiple of 8)
    x3d = x_fm.reshape(2, R, _LANES)

    # Block dim equals the full row extent for small batches (always legal),
    # otherwise a large multiple-of-8 tile; partial edge blocks are masked.
    tbs_eff = min(tbs, R)
    sub = _pick_sub(tbs_eff)
    n_tiles = pl.cdiv(R, tbs_eff)

    out = pl.pallas_call(
        functools.partial(mlp_kernel, sub=sub),
        out_shape=jax.ShapeDtypeStruct((R, _LANES), jnp.float32),
        grid_spec=pl.GridSpec(
            grid=(n_tiles,),
            in_specs=[
                # 21 scalars: single tiny untiled SMEM operand (scalar path).
                pl.BlockSpec(memory_space=pltpu.MemorySpace.SMEM),
                # sublane+lane dense batch tile of the two input features.
                pl.BlockSpec((2, tbs_eff, _LANES), lambda i: (0, i, 0)),
            ],
            out_specs=pl.BlockSpec((tbs_eff, _LANES), lambda i: (i, 0)),
        ),
        # TODO(synk): on v7x switch this axis to pltpu.CORE_PARALLEL to shard
        # the batch across both TensorCores; "parallel" is the portable choice.
        compiler_params=pltpu.CompilerParams(
            dimension_semantics=("parallel",),
        ),
        cost_estimate=pl.CostEstimate(
            flops=35 * Bp,                  # 5*(2 mul + 2 add + max + mul + add)
            transcendentals=0,
            bytes_accessed=12 * Bp + 84,    # 8 B in + 4 B out per batch element
        ),
    )(params, x3d)

    out_flat = out.reshape(-1)
    if Bp != B:
        out_flat = out_flat[:B]
    return out_flat.reshape(B, 1)


def net_forward(x, params, *, tbs=2048):
    """Torch-layout convenience wrapper. x: (B, 2) f32. The transpose costs one
    extra HBM pass; prefer net_forward_feature_major for large batches."""
    return net_forward_feature_major(
        jnp.transpose(x).astype(jnp.float32), params, tbs=tbs)


def init_params(key):
    # Deterministic init mimicking torch.nn.Linear default:
    # U(-1/sqrt(fan_in), 1/sqrt(fan_in)) for both weight and bias.
    k1, k2, k3, k4 = jax.random.split(key, 4)
    bound1 = 1.0 / jnp.sqrt(2.0)
    bound2 = 1.0 / jnp.sqrt(5.0)
    w1 = jax.random.uniform(k1, (5, 2), jnp.float32, -bound1, bound1)
    b1 = jax.random.uniform(k2, (5,), jnp.float32, -bound1, bound1)
    w2 = jax.random.uniform(k3, (1, 5), jnp.float32, -bound2, bound2)
    b2 = jax.random.uniform(k4, (1,), jnp.float32, -bound2, bound2)
    return w1, b1, w2, b2


def reference(x, w1, b1, w2, b2):
    return jnp.maximum(x @ w1.T + b1, 0.0) @ w2.T + b2


if __name__ == "__main__":
    key = jax.random.PRNGKey(0)
    kx1, kx2, kx3, kp = jax.random.split(key, 4)

    w1, b1, w2, b2 = init_params(kp)
    params = pack_params(w1, b1, w2, b2)     # packed once, outside the hot path

    # 1) Tiny batch through the torch-layout wrapper (mirrors Net.forward).
    B = 4
    x = jax.random.normal(kx1, (B, 2), jnp.float32)
    out = jax.block_until_ready(net_forward(x, params))
    ref = reference(x, w1, b1, w2, b2)
    assert out.shape == (B, 1)
    assert jnp.allclose(out, ref, atol=1e-5), "mismatch vs reference (B=4)"

    # 2) Non-aligned batch with a small tile: exercises batch padding, a
    #    multi-step grid and a masked partial edge block (R=24, tbs=16).
    B2 = 2049
    x2 = jax.random.normal(kx2, (2, B2), jnp.float32)     # feature-major fast path
    out2 = jax.block_until_ready(net_forward_feature_major(x2, params, tbs=16))
    ref2 = reference(x2.T, w1, b1, w2, b2)
    assert out2.shape == (B2, 1)
    assert jnp.allclose(out2, ref2, atol=1e-5), "mismatch vs reference (B=2049)"

    # 3) Aligned batch through the default large tile: zero-copy reshape path.
    B3 = 4096
    x3 = jax.random.normal(kx3, (2, B3), jnp.float32)
    out3 = jax.block_until_ready(net_forward_feature_major(x3, params))
    ref3 = reference(x3.T, w1, b1, w2, b2)
    assert out3.shape == (B3, 1)
    assert jnp.allclose(out3, ref3, atol=1e-5), "mismatch vs reference (B=4096)"

    print("KERNEL_OK")
</pallas_src>

<mosaic_0001>
module attributes {stable_mosaic.version = 11 : i64} {
  func.func @mlp_kernel(%arg0: i32, %arg1: memref<21xf32, #tpu.memory_space<smem>>, %arg2: memref<2x8x128xf32, #tpu.memory_space<vmem>>, %arg3: memref<8x128xf32, #tpu.memory_space<vmem>>) attributes {dimension_semantics = [#tpu.dimension_semantics<parallel>], iteration_bounds = array<i64: 1>, scalar_prefetch = 0 : i64, scratch_operands = 0 : i64, tpu.core_type = #tpu.core_type<tc>, window_params = [{transform_indices = @transform_0, window_bounds = array<i64: 21>}, {transform_indices = @transform_1, window_bounds = array<i64: 2, 8, 128>}, {transform_indices = @transform_2, window_bounds = array<i64: 8, 128>}]} {
    %c0 = arith.constant 0 : index
    %0 = memref.load %arg1[%c0] : memref<21xf32, #tpu.memory_space<smem>>
    %c1 = arith.constant 1 : index
    %1 = memref.load %arg1[%c1] : memref<21xf32, #tpu.memory_space<smem>>
    %c10 = arith.constant 10 : index
    %2 = memref.load %arg1[%c10] : memref<21xf32, #tpu.memory_space<smem>>
    %c15 = arith.constant 15 : index
    %3 = memref.load %arg1[%c15] : memref<21xf32, #tpu.memory_space<smem>>
    %c2 = arith.constant 2 : index
    %4 = memref.load %arg1[%c2] : memref<21xf32, #tpu.memory_space<smem>>
    %c3 = arith.constant 3 : index
    %5 = memref.load %arg1[%c3] : memref<21xf32, #tpu.memory_space<smem>>
    %c11 = arith.constant 11 : index
    %6 = memref.load %arg1[%c11] : memref<21xf32, #tpu.memory_space<smem>>
    %c16 = arith.constant 16 : index
    %7 = memref.load %arg1[%c16] : memref<21xf32, #tpu.memory_space<smem>>
    %c4 = arith.constant 4 : index
    %8 = memref.load %arg1[%c4] : memref<21xf32, #tpu.memory_space<smem>>
    %c5 = arith.constant 5 : index
    %9 = memref.load %arg1[%c5] : memref<21xf32, #tpu.memory_space<smem>>
    %c12 = arith.constant 12 : index
    %10 = memref.load %arg1[%c12] : memref<21xf32, #tpu.memory_space<smem>>
    %c17 = arith.constant 17 : index
    %11 = memref.load %arg1[%c17] : memref<21xf32, #tpu.memory_space<smem>>
    %c6 = arith.constant 6 : index
    %12 = memref.load %arg1[%c6] : memref<21xf32, #tpu.memory_space<smem>>
    %c7 = arith.constant 7 : index
    %13 = memref.load %arg1[%c7] : memref<21xf32, #tpu.memory_space<smem>>
    %c13 = arith.constant 13 : index
    %14 = memref.load %arg1[%c13] : memref<21xf32, #tpu.memory_space<smem>>
    %c18 = arith.constant 18 : index
    %15 = memref.load %arg1[%c18] : memref<21xf32, #tpu.memory_space<smem>>
    %c8 = arith.constant 8 : index
    %16 = memref.load %arg1[%c8] : memref<21xf32, #tpu.memory_space<smem>>
    %c9 = arith.constant 9 : index
    %17 = memref.load %arg1[%c9] : memref<21xf32, #tpu.memory_space<smem>>
    %c14 = arith.constant 14 : index
    %18 = memref.load %arg1[%c14] : memref<21xf32, #tpu.memory_space<smem>>
    %c19 = arith.constant 19 : index
    %19 = memref.load %arg1[%c19] : memref<21xf32, #tpu.memory_space<smem>>
    %c20 = arith.constant 20 : index
    %20 = memref.load %arg1[%c20] : memref<21xf32, #tpu.memory_space<smem>>
    %21 = vector.broadcast %20 : f32 to vector<8x128xf32>
    %c0_i32 = arith.constant 0 : i32
    %c8_i32 = arith.constant 8 : i32
    %22 = arith.muli %c0_i32, %c8_i32 : i32
    %23 = tpu.assume_multiple %22, 8 : i32
    %c0_0 = arith.constant 0 : index
    %24 = arith.index_cast %23 : i32 to index
    %c0_1 = arith.constant 0 : index
    %25 = vector.load %arg2[%c0_0, %24, %c0_1] : memref<2x8x128xf32, #tpu.memory_space<vmem>>, vector<1x8x128xf32>
    %26 = vector.shape_cast %25 : vector<1x8x128xf32> to vector<8x128xf32>
    %c1_2 = arith.constant 1 : index
    %27 = arith.index_cast %23 : i32 to index
    %c0_3 = arith.constant 0 : index
    %28 = vector.load %arg2[%c1_2, %27, %c0_3] : memref<2x8x128xf32, #tpu.memory_space<vmem>>, vector<1x8x128xf32>
    %29 = vector.shape_cast %28 : vector<1x8x128xf32> to vector<8x128xf32>
    %30 = vector.broadcast %0 : f32 to vector<8x128xf32>
    %31 = arith.mulf %26, %30 : vector<8x128xf32>
    %32 = vector.broadcast %1 : f32 to vector<8x128xf32>
    %33 = arith.mulf %29, %32 : vector<8x128xf32>
    %34 = arith.addf %31, %33 : vector<8x128xf32>
    %35 = vector.broadcast %2 : f32 to vector<8x128xf32>
    %36 = arith.addf %34, %35 : vector<8x128xf32>
    %cst = arith.constant 0.000000e+00 : f32
    %37 = vector.broadcast %cst : f32 to vector<8x128xf32>
    %38 = arith.maximumf %36, %37 : vector<8x128xf32>
    %39 = vector.broadcast %3 : f32 to vector<8x128xf32>
    %40 = arith.mulf %38, %39 : vector<8x128xf32>
    %41 = arith.addf %21, %40 : vector<8x128xf32>
    %42 = vector.broadcast %4 : f32 to vector<8x128xf32>
    %43 = arith.mulf %26, %42 : vector<8x128xf32>
    %44 = vector.broadcast %5 : f32 to vector<8x128xf32>
    %45 = arith.mulf %29, %44 : vector<8x128xf32>
    %46 = arith.addf %43, %45 : vector<8x128xf32>
    %47 = vector.broadcast %6 : f32 to vector<8x128xf32>
    %48 = arith.addf %46, %47 : vector<8x128xf32>
    %cst_4 = arith.constant 0.000000e+00 : f32
    %49 = vector.broadcast %cst_4 : f32 to vector<8x128xf32>
    %50 = arith.maximumf %48, %49 : vector<8x128xf32>
    %51 = vector.broadcast %7 : f32 to vector<8x128xf32>
    %52 = arith.mulf %50, %51 : vector<8x128xf32>
    %53 = arith.addf %41, %52 : vector<8x128xf32>
    %54 = vector.broadcast %8 : f32 to vector<8x128xf32>
    %55 = arith.mulf %26, %54 : vector<8x128xf32>
    %56 = vector.broadcast %9 : f32 to vector<8x128xf32>
    %57 = arith.mulf %29, %56 : vector<8x128xf32>
    %58 = arith.addf %55, %57 : vector<8x128xf32>
    %59 = vector.broadcast %10 : f32 to vector<8x128xf32>
    %60 = arith.addf %58, %59 : vector<8x128xf32>
    %cst_5 = arith.constant 0.000000e+00 : f32
    %61 = vector.broadcast %cst_5 : f32 to vector<8x128xf32>
    %62 = arith.maximumf %60, %61 : vector<8x128xf32>
    %63 = vector.broadcast %11 : f32 to vector<8x128xf32>
    %64 = arith.mulf %62, %63 : vector<8x128xf32>
    %65 = arith.addf %53, %64 : vector<8x128xf32>
    %66 = vector.broadcast %12 : f32 to vector<8x128xf32>
    %67 = arith.mulf %26, %66 : vector<8x128xf32>
    %68 = vector.broadcast %13 : f32 to vector<8x128xf32>
    %69 = arith.mulf %29, %68 : vector<8x128xf32>
    %70 = arith.addf %67, %69 : vector<8x128xf32>
    %71 = vector.broadcast %14 : f32 to vector<8x128xf32>
    %72 = arith.addf %70, %71 : vector<8x128xf32>
    %cst_6 = arith.constant 0.000000e+00 : f32
    %73 = vector.broadcast %cst_6 : f32 to vector<8x128xf32>
    %74 = arith.maximumf %72, %73 : vector<8x128xf32>
    %75 = vector.broadcast %15 : f32 to vector<8x128xf32>
    %76 = arith.mulf %74, %75 : vector<8x128xf32>
    %77 = arith.addf %65, %76 : vector<8x128xf32>
    %78 = vector.broadcast %16 : f32 to vector<8x128xf32>
    %79 = arith.mulf %26, %78 : vector<8x128xf32>
    %80 = vector.broadcast %17 : f32 to vector<8x128xf32>
    %81 = arith.mulf %29, %80 : vector<8x128xf32>
    %82 = arith.addf %79, %81 : vector<8x128xf32>
    %83 = vector.broadcast %18 : f32 to vector<8x128xf32>
    %84 = arith.addf %82, %83 : vector<8x128xf32>
    %cst_7 = arith.constant 0.000000e+00 : f32
    %85 = vector.broadcast %cst_7 : f32 to vector<8x128xf32>
    %86 = arith.maximumf %84, %85 : vector<8x128xf32>
    %87 = vector.broadcast %19 : f32 to vector<8x128xf32>
    %88 = arith.mulf %86, %87 : vector<8x128xf32>
    %89 = arith.addf %77, %88 : vector<8x128xf32>
    %90 = arith.index_cast %23 : i32 to index
    %c0_8 = arith.constant 0 : index
    %91 = vector.load %arg3[%90, %c0_8] : memref<8x128xf32, #tpu.memory_space<vmem>>, vector<8x128xf32>
    tpu.vector_store %arg3[%90, %c0_8], %89 {strides = array<i32>} : memref<8x128xf32, #tpu.memory_space<vmem>>, vector<8x128xf32>,
    %c1_i32 = arith.constant 1 : i32
    return
  }
  func.func @transform_0(%arg0: i32) -> i32 {
    %c0_i32 = arith.constant 0 : i32
    %c0_i32_0 = arith.constant 0 : i32
    return %c0_i32 : i32
  }
  func.func @transform_1(%arg0: i32) -> (i32, i32, i32) {
    %c0_i32 = arith.constant 0 : i32
    %c0_i32_0 = arith.constant 0 : i32
    %c0_i32_1 = arith.constant 0 : i32
    return %c0_i32, %arg0, %c0_i32_0 : i32, i32, i32
  }
  func.func @transform_2(%arg0: i32) -> (i32, i32) {
    %c0_i32 = arith.constant 0 : i32
    %c0_i32_0 = arith.constant 0 : i32
    return %arg0, %c0_i32 : i32, i32
  }
}

</mosaic_0001>

<bundles_post_ra>
// kernel: net_forward_feature_major.1
= control target key start
LH: loop header
LB: loop body
LE: loop exit
PB: predicated region body
PF: predicated region fallthrough
CT: control target
= control target key end

     0   :  { %7 = vsyncpa [#allocation3], 0  ;;  %s197_s0 = inlined_call_operand.vmem [shape: f32[21], index: 0, kind: input, shape index: {}]   ;;  %s198_s1 = inlined_call_operand.vmem [shape: f32[2,8,128], index: 1, kind: input, shape index: {}]   ;;  %s199_s2 = inlined_call_operand.vmem [shape: f32[8,128], index: 2, kind: output, shape index: {}]  }
   0x1   :  { %s14_s11 = sshll.u32 %s197_s0, 4  ;;  %s15_s11 = int_to_ptr.vmem [resolvable:$true] %s14_s11 }
   0x2   :  { %s134_s12 = scalar_lea.vmem %s15_s11, 16  ;;  %p139_p1 = scmp.lt.s32.totalorder %s15_s11, %s15_s11 }
   0x3   :  { %p135_p0 = scmp.ne.s32.totalorder %s15_s11, %s134_s12  ;;  %p140_p2 = scmp.lt.s32.totalorder %s134_s12, %s134_s12 }
   0x5   :  { %p141_p3 = por %p140_p2, %p139_p1 }
   0x7   :  { %p142_p4 = pnand %p141_p3, %p135_p0 }
   0x9   :  { %145 = shalt.err (!%p142_p4)
}
   0xa   :  { %s148_s13 = smov [#allocation2]  }
   0xb   :  { %17 = dma.vmem_to_smem %s15_s11, 16, %s148_s13, [#allocation3]  }
   0xc   :  { %146 = dma.done.wait [#allocation3], 16  }
   0xd   :  { %147 = vsyncadd [#allocation3], 4294967280 }
   0xe   :  { %23 = sfence }
   0xf   :  { %s24_s14 = sld [smem:[#allocation2]]  ;;  %v46_v0 = vld [vmem:[%s198_s1] sm:$0xff]  ;;  %v132_v1 = vld [vmem:[%s198_s1 + $0x8] sm:$0xff] }
  0x10   :  { %s112_s15 = sld [smem:[#allocation2 + $0x1]] }
  0x11   :  { %s113_s16 = sld [smem:[#allocation2 + $0xa]] }
  0x12   :  { %s167_s17 = sld [smem:[#allocation2 + $0xf]] }
  0x13   :  { %s115_s18 = sld [smem:[#allocation2 + $0x2]] }
  0x14   :  { %s116_s20 = sld [smem:[#allocation2 + $0x3]] }
  0x15   :  { %s117_s23 = sld [smem:[#allocation2 + $0xb]]  ;;  %v50_v2 = vstv %s24_s14 }
  0x16   :  { %s175_s24 = sld [smem:[#allocation2 + $0x10]]  ;;  %v51_v3 = vmul.f32 %v50_v2, %v46_v0  ;;  %v52_v4 = vstv %s112_s15 }
  0x17   :  { %s119_s25 = sld [smem:[#allocation2 + $0x4]]  ;;  %v53_v5 = vmul.f32 %v132_v1, %v52_v4  ;;  %v55_v10 = vstv %s113_s16 }
  0x18   :  { %s120_s26 = sld [smem:[#allocation2 + $0x5]]  ;;  %v58_v26 = vstv %s167_s17 }
  0x19   :  { %s177_s27 = sld [smem:[#allocation2 + $0xc]]  ;;  %v61_v6 = vstv %s115_s18  ;;  %v54_v7 = vadd.f32 %v53_v5, %v51_v3 }
  0x1a   :  { %s179_s28 = sld [smem:[#allocation2 + $0x11]]  ;;  %v62_v8 = vmul.f32 %v61_v6, %v46_v0  ;;  %v63_v9 = vstv %s116_s20 }
  0x1b   :  { %s123_s29 = sld [smem:[#allocation2 + $0x6]]  ;;  %v64_v11 = vmul.f32 %v132_v1, %v63_v9  ;;  %v66_v13 = vstv %s117_s23  ;;  %v56_v15 = vadd.f32 %v55_v10, %v54_v7 }
  0x1c   :  { %s124_s1 = sld [smem:[#allocation2 + $0x7]]  ;;  %v69_v31 = vstv %s175_s24 }
  0x1d   :  { %s181_s30 = sld [smem:[#allocation2 + $0xd]]  ;;  %v65_v12 = vadd.f32 %v64_v11, %v62_v8  ;;  %v72_v14 = vstv %s119_s25  ;;  %v57_v23 = vmax.f32 %v56_v15, 0.0 }
  0x1e   :  { %s183_s3 = sld [smem:[#allocation2 + $0x12]]  ;;  %v73_v16 = vmul.f32 %v72_v14, %v46_v0  ;;  %v74_v17 = vstv %s120_s26 }
  0x1f   :  { %s127_s4 = sld [smem:[#allocation2 + $0x8]]  ;;  %v75_v18 = vmul.f32 %v132_v1, %v74_v17  ;;  %v67_v19 = vadd.f32 %v66_v13, %v65_v12  ;;  %v77_v20 = vstv %s177_s27  ;;  %v59_v34 = vmul.f32 %v58_v26, %v57_v23 }
  0x20   :  { %s128_s5 = sld [smem:[#allocation2 + $0x9]]  ;;  %v80_v38 = vstv %s179_s28 }
  0x21   :  { %s186_s6 = sld [smem:[#allocation2 + $0xe]]  ;;  %v76_v21 = vadd.f32 %v75_v18, %v73_v16  ;;  %v83_v22 = vstv %s123_s29  ;;  %v68_v29 = vmax.f32 %v67_v19, 0.0 }
  0x22   :  { %v84_v24 = vmul.f32 %v83_v22, %v46_v0  ;;  %v85_v25 = vstv %s124_s1  ;;  %s131_s7 = sld [smem:[#allocation2 + $0x14]] }
  0x23   :  { %v78_v27 = vadd.f32 %v77_v20, %v76_v21  ;;  %v86_v28 = vmul.f32 %v132_v1, %v85_v25  ;;  %s130_s8 = sld [smem:[#allocation2 + $0x13]]  ;;  %v88_v30 = vstv %s181_s30  ;;  %v70_v41 = vmul.f32 %v69_v31, %v68_v29 }
  0x24   :  { %v91_v45 = vstv %s183_s3 }
  0x25   :  { %v87_v32 = vadd.f32 %v86_v28, %v84_v24  ;;  %v94_v33 = vstv %s127_s4  ;;  %v79_v35 = vmax.f32 %v78_v27, 0.0 }
  0x26   :  { %v95_v36 = vmul.f32 %v94_v33, %v46_v0  ;;  %v96_v37 = vstv %s128_s5 }
  0x27   :  { %v89_v39 = vadd.f32 %v88_v30, %v87_v32  ;;  %v97_v40 = vmul.f32 %v132_v1, %v96_v37  ;;  %v99_v42 = vstv %s186_s6  ;;  %v81_v48 = vmul.f32 %v80_v38, %v79_v35 }
  0x28   :  { %v45_v43 = vstv %s131_s7 }
  0x29   :  { %v90_v44 = vmax.f32 %v89_v39, 0.0  ;;  %v98_v46 = vadd.f32 %v97_v40, %v95_v36  ;;  %v60_v47 = vadd.f32 %v59_v34, %v45_v43  ;;  %v102_v52 = vstv %s130_s8 }
  0x2b   :  { %v100_v49 = vadd.f32 %v99_v42, %v98_v46  ;;  %v71_v50 = vadd.f32 %v70_v41, %v60_v47  ;;  %v92_v51 = vmul.f32 %v91_v45, %v90_v44 }
  0x2d   :  { %v101_v53 = vmax.f32 %v100_v49, 0.0  ;;  %v82_v54 = vadd.f32 %v81_v48, %v71_v50 }
  0x2f   :  { %v103_v55 = vmul.f32 %v102_v52, %v101_v53  ;;  %v93_v56 = vadd.f32 %v92_v51, %v82_v54 }
  0x31   :  { %v104_v57 = vadd.f32 %v103_v55, %v93_v56 }
  0x33   :  { %105 = vst [vmem:[%s199_s2] sm:$0xff] %v104_v57 }
  0x34   :  { %110 = vsyncpa [#allocation3], 1 }

</bundles_post_ra>
